<compile_context>
chip_gen: v5e
topology: v5e:2x2
jax: 0.10.0
libtpu: 0.0.40
codegen_flags: <defaults>
</compile_context>

<pallas_src>
import functools
import math

import jax
import jax.numpy as jnp
from jax.experimental import pallas as pl
from jax.experimental.pallas import tpu as pltpu


# ------------------------------------------------------------------ kernels --

def _fused_kernel(x_ref, w1_ref, b1_ref, w2_ref, b2_ref, o_ref, *, inv_t):
    """Whole (b_tile, C, T) slab resident: reduce -> excite -> apply."""
    x = x_ref[...]                                              # (bt, C, T)
    s = jnp.sum(x.astype(jnp.float32), axis=2) * inv_t          # (bt, C) mean over T
    h = jnp.dot(s, w1_ref[...], preferred_element_type=jnp.float32) + b1_ref[...]
    h = jnp.maximum(h, 0.0)                                     # relu
    g = jnp.dot(h, w2_ref[...], preferred_element_type=jnp.float32) + b2_ref[...]
    g = jax.nn.sigmoid(g)                                       # (bt, C) f32 gate
    # Gate cast to x.dtype for the multiply (bf16 inputs: matches a bf16 module).
    o_ref[...] = (x * g.astype(x.dtype)[:, :, None]).astype(o_ref.dtype)


def _reduce_kernel(x_ref, sum_ref, *, t_total, tt):
    """Grid (B, C-split, T tiles); T is the reduction ('arbitrary') axis.

    The f32 output block is the accumulator (revisited across the T axis).
    """
    t = pl.program_id(2)

    @pl.when(t == 0)
    def _():
        sum_ref[...] = jnp.zeros_like(sum_ref)

    x = x_ref[...].astype(jnp.float32)                          # (bt, c_blk, tt)
    if t_total % tt != 0:
        # Ragged last T tile: the block padding past the true T is unspecified
        # memory and must not reach the sum.
        col = jax.lax.broadcasted_iota(jnp.int32, x.shape, 2)
        x = jnp.where(col + t * tt < t_total, x, 0.0)
    sum_ref[...] += jnp.sum(x, axis=2, keepdims=True)           # lane reduce


def _apply_kernel(x_ref, gate_ref, o_ref):
    """Grid (B, T tiles); pure streaming multiply, both axes 'parallel'.

    gate is (bt, C, 1) and broadcasts along the T lane axis.  Out-of-bounds
    lanes of a ragged last tile are dropped by Pallas on store.
    """
    x = x_ref[...]
    o_ref[...] = (x * gate_ref[...].astype(x.dtype)).astype(o_ref.dtype)


# ------------------------------------------------------------------ helpers --

def _round_down(v, m):
    return max(m, v // m * m)


def _vmem_budget_bytes():
    """Generation-aware VMEM budget: ~3/4 of physical capacity.

    128 MiB parts (v5e/v6e) -> 96 MiB; 64 MiB per-TC (v7x) -> 48 MiB.
    """
    cap = 64 * 1024 * 1024
    try:
        cap = int(pltpu.get_tpu_info().vmem_capacity_bytes)
    except Exception:
        pass
    return int(cap * 3 // 4)


def _largest_divisor_with_bytes(n, per_unit_bytes, byte_cap):
    best = 1
    for d in range(1, n + 1):
        if n % d == 0 and d * per_unit_bytes <= byte_cap:
            best = d
    return best


# ------------------------------------------------------------------ wrapper --

def se_connect(x, w1, b1, w2, b2, *, t_tile=None, force_two_pass=False):
    """SE_Connect forward on x: (B, C, T); returns same shape/dtype.

    w1: (C, D); b1: (1, D); w2: (D, C); b2: (1, C)  (transposed nn.Linear).
    The caller's x is never aliased (it is not donated).
    """
    B, C, T = x.shape
    D = w1.shape[1]
    itemsize = jnp.dtype(x.dtype).itemsize
    budget = _vmem_budget_bytes()
    w_bytes = (C * D + D + D * C + C) * 4
    target_tile_bytes = 2 * 1024 * 1024          # ~2 MiB of x per grid step

    # -------- fused single pass: 1 read + 1 write of x ----------------------
    slab_bytes = C * T * itemsize
    b_tile = _largest_divisor_with_bytes(B, slab_bytes, target_tile_bytes)
    # Conservative estimate: double-buffered in/out slabs (x dtype) + f32
    # temporaries for the reduce, + double-buffered (tiny) weights.
    fused_need = b_tile * C * T * (4 * itemsize + 8) + 2 * w_bytes
    if not force_two_pass and fused_need <= budget:
        return pl.pallas_call(
            functools.partial(_fused_kernel, inv_t=1.0 / T),
            out_shape=jax.ShapeDtypeStruct((B, C, T), x.dtype),
            grid=(B // b_tile,),
            in_specs=[
                pl.BlockSpec((b_tile, C, T), lambda b: (b, 0, 0)),
                pl.BlockSpec((C, D), lambda b: (0, 0)),
                pl.BlockSpec((1, D), lambda b: (0, 0)),
                pl.BlockSpec((D, C), lambda b: (0, 0)),
                pl.BlockSpec((1, C), lambda b: (0, 0)),
            ],
            out_specs=pl.BlockSpec((b_tile, C, T), lambda b: (b, 0, 0)),
            compiler_params=pltpu.CompilerParams(
                dimension_semantics=("parallel",),
                vmem_limit_bytes=budget),
        )(x, w1, b1, w2, b2)

    # -------- two streaming passes: 2 reads + 1 write of x ------------------
    b_tile = 1
    nb = B
    # Give pass 1 a >= 2-wide parallel axis for v7x even when B == 1 by
    # splitting channels (the per-channel sums are independent).
    if nb >= 2 or C < 16 or C % 16 != 0:
        nc, c_blk = 1, C
    else:
        nc, c_blk = 2, C // 2

    # Byte-targeted T tile on the lane axis: multiple of 128, or the full T.
    tt = t_tile if t_tile is not None else target_tile_bytes // max(1, C * itemsize)
    if tt >= T:
        tt = T
    else:
        tt = _round_down(tt, 128)
        if tt >= T:
            tt = T
    nt = pl.cdiv(T, tt)

    # pass 1: per-(batch, channel) sums over T, accumulated in the f32 output
    # block across the 'arbitrary' T axis.
    sums = pl.pallas_call(
        functools.partial(_reduce_kernel, t_total=T, tt=tt),
        out_shape=jax.ShapeDtypeStruct((B, C, 1), jnp.float32),
        grid=(nb, nc, nt),
        in_specs=[pl.BlockSpec((b_tile, c_blk, tt), lambda b, c, t: (b, c, t))],
        out_specs=pl.BlockSpec((b_tile, c_blk, 1), lambda b, c, t: (b, c, 0)),
        compiler_params=pltpu.CompilerParams(
            dimension_semantics=("parallel", "parallel", "arbitrary"),
            vmem_limit_bytes=budget),
    )(x)

    # excite on the tiny (B, C) sums as plain XLA: no weights (and no wasted
    # double-buffered weight VMEM) inside the streaming kernels.
    mean = sums[:, :, 0] * (1.0 / T)
    h = jnp.maximum(mean @ w1 + b1, 0.0)
    gate = jax.nn.sigmoid(h @ w2 + b2)[:, :, None]               # (B, C, 1) f32

    # pass 2: stream x again and apply the gate (broadcast along T lanes).
    # If profiling shows exposed DMA at this tile size, the cheap fix is
    # pipeline_mode=pl.Buffered(3) on the x spec rather than a bigger tile.
    out = pl.pallas_call(
        _apply_kernel,
        out_shape=jax.ShapeDtypeStruct((B, C, T), x.dtype),
        grid=(nb, nt),
        in_specs=[
            pl.BlockSpec((b_tile, C, tt), lambda b, t: (b, 0, t)),
            pl.BlockSpec((b_tile, C, 1), lambda b, t: (b, 0, 0)),
        ],
        out_specs=pl.BlockSpec((b_tile, C, tt), lambda b, t: (b, 0, t)),
        compiler_params=pltpu.CompilerParams(
            dimension_semantics=("parallel", "parallel"),
            vmem_limit_bytes=budget),
    )(x, gate)
    return out


# ---------------------------------------------------------------- utilities --

def init_params(key, channels, bottleneck):
    """nn.Linear-style init; weights stored transposed (in, out) for the kernel."""
    k1, k2, k3, k4 = jax.random.split(key, 4)
    lim1 = 1.0 / math.sqrt(channels)
    lim2 = 1.0 / math.sqrt(bottleneck)
    w1 = jax.random.uniform(k1, (channels, bottleneck), jnp.float32, -lim1, lim1)
    b1 = jax.random.uniform(k2, (1, bottleneck), jnp.float32, -lim1, lim1)
    w2 = jax.random.uniform(k3, (bottleneck, channels), jnp.float32, -lim2, lim2)
    b2 = jax.random.uniform(k4, (1, channels), jnp.float32, -lim2, lim2)
    return w1, b1, w2, b2


def se_connect_ref(x, w1, b1, w2, b2):
    s = x.mean(axis=2)
    h = jnp.maximum(s @ w1 + b1, 0.0)
    g = jax.nn.sigmoid(h @ w2 + b2)
    return x * g[:, :, None]


if __name__ == "__main__":
    B, C, T, D = 2, 64, 300, 32        # batch, channels, time, se_bottleneck_dim
    key = jax.random.PRNGKey(0)
    kx, kp = jax.random.split(key)
    x = jax.random.normal(kx, (B, C, T), jnp.float32)
    w1, b1, w2, b2 = init_params(kp, C, D)
    ref = se_connect_ref(x, w1, b1, w2, b2)

    # Path 1: fused single pass (default for shapes that fit VMEM).
    out_fused = jax.block_until_ready(jax.jit(se_connect)(x, w1, b1, w2, b2))
    assert out_fused.shape == x.shape
    assert jnp.allclose(out_fused, ref, atol=1e-5, rtol=1e-5)

    # Path 2: two-pass streaming with a ragged last T tile (T=300, tt=128).
    stream_fn = jax.jit(functools.partial(se_connect, t_tile=128, force_two_pass=True))
    out_stream = jax.block_until_ready(stream_fn(x, w1, b1, w2, b2))
    assert jnp.allclose(out_stream, ref, atol=1e-5, rtol=1e-5)

    # Path 2 with B == 1: exercises the channel-split parallel reduce grid.
    x1 = x[:1]
    out1 = jax.block_until_ready(stream_fn(x1, w1, b1, w2, b2))
    assert jnp.allclose(out1, se_connect_ref(x1, w1, b1, w2, b2), atol=1e-5, rtol=1e-5)

    print("KERNEL_OK")
</pallas_src>

<mosaic_0001>
module attributes {stable_mosaic.version = 11 : i64} {
  func.func @_fused_kernel(%arg0: i32, %arg1: memref<2x64x300xf32, #tpu.memory_space<vmem>>, %arg2: memref<64x32xf32, #tpu.memory_space<vmem>>, %arg3: memref<1x32xf32, #tpu.memory_space<vmem>>, %arg4: memref<32x64xf32, #tpu.memory_space<vmem>>, %arg5: memref<1x64xf32, #tpu.memory_space<vmem>>, %arg6: memref<2x64x300xf32, #tpu.memory_space<vmem>>) attributes {dimension_semantics = [#tpu.dimension_semantics<parallel>], iteration_bounds = array<i64: 1>, scalar_prefetch = 0 : i64, scratch_operands = 0 : i64, tpu.core_type = #tpu.core_type<tc>, window_params = [{transform_indices = @transform_0, window_bounds = array<i64: 2, 64, 300>}, {pipeline_mode = #tpu.pipeline_mode<synchronous>, transform_indices = @transform_1, window_bounds = array<i64: 64, 32>}, {pipeline_mode = #tpu.pipeline_mode<synchronous>, transform_indices = @transform_2, window_bounds = array<i64: 1, 32>}, {pipeline_mode = #tpu.pipeline_mode<synchronous>, transform_indices = @transform_3, window_bounds = array<i64: 32, 64>}, {pipeline_mode = #tpu.pipeline_mode<synchronous>, transform_indices = @transform_4, window_bounds = array<i64: 1, 64>}, {transform_indices = @transform_5, window_bounds = array<i64: 2, 64, 300>}]} {
    %c0 = arith.constant 0 : index
    %c0_0 = arith.constant 0 : index
    %c0_1 = arith.constant 0 : index
    %0 = vector.load %arg1[%c0, %c0_0, %c0_1] : memref<2x64x300xf32, #tpu.memory_space<vmem>>, vector<2x64x300xf32>
    %cst = arith.constant dense<0.000000e+00> : vector<2x64xf32>
    %1 = vector.multi_reduction <add>, %0, %cst [2] : vector<2x64x300xf32> to vector<2x64xf32>
    %cst_2 = arith.constant 0.00333333341 : f32
    %2 = vector.broadcast %cst_2 : f32 to vector<2x64xf32>
    %3 = arith.mulf %1, %2 : vector<2x64xf32>
    %c0_3 = arith.constant 0 : index
    %c0_4 = arith.constant 0 : index
    %4 = vector.load %arg2[%c0_3, %c0_4] : memref<64x32xf32, #tpu.memory_space<vmem>>, vector<64x32xf32>
    %cst_5 = arith.constant dense<0.000000e+00> : vector<2x32xf32>
    %5 = tpu.matmul %3, %4, %cst_5 {dimension_numbers = #tpu.dot_dimension_numbers<[1], [0], [0], [1], [0, 0, 1, 1], [], []>} : vector<2x64xf32>, vector<64x32xf32>, vector<2x32xf32> -> vector<2x32xf32>
    %c0_6 = arith.constant 0 : index
    %c0_7 = arith.constant 0 : index
    %6 = vector.load %arg3[%c0_6, %c0_7] : memref<1x32xf32, #tpu.memory_space<vmem>>, vector<1x32xf32>
    %7 = vector.broadcast %6 : vector<1x32xf32> to vector<2x32xf32>
    %8 = arith.addf %5, %7 : vector<2x32xf32>
    %cst_8 = arith.constant 0.000000e+00 : f32
    %9 = vector.broadcast %cst_8 : f32 to vector<2x32xf32>
    %10 = arith.maximumf %8, %9 : vector<2x32xf32>
    %c0_9 = arith.constant 0 : index
    %c0_10 = arith.constant 0 : index
    %11 = vector.load %arg4[%c0_9, %c0_10] : memref<32x64xf32, #tpu.memory_space<vmem>>, vector<32x64xf32>
    %cst_11 = arith.constant dense<0.000000e+00> : vector<2x64xf32>
    %12 = tpu.matmul %10, %11, %cst_11 {dimension_numbers = #tpu.dot_dimension_numbers<[1], [0], [0], [1], [0, 0, 1, 1], [], []>} : vector<2x32xf32>, vector<32x64xf32>, vector<2x64xf32> -> vector<2x64xf32>
    %c0_12 = arith.constant 0 : index
    %c0_13 = arith.constant 0 : index
    %13 = vector.load %arg5[%c0_12, %c0_13] : memref<1x64xf32, #tpu.memory_space<vmem>>, vector<1x64xf32>
    %14 = vector.broadcast %13 : vector<1x64xf32> to vector<2x64xf32>
    %15 = arith.addf %12, %14 : vector<2x64xf32>
    %16 = arith.negf %15 : vector<2x64xf32>
    %17 = math.exp %16 : vector<2x64xf32>
    %cst_14 = arith.constant 1.000000e+00 : f32
    %18 = vector.broadcast %cst_14 : f32 to vector<2x64xf32>
    %19 = arith.addf %18, %17 : vector<2x64xf32>
    %20 = arith.divf %18, %19 : vector<2x64xf32>
    %21 = vector.shape_cast %20 : vector<2x64xf32> to vector<2x64x1xf32>
    %22 = vector.broadcast %21 : vector<2x64x1xf32> to vector<2x64x300xf32>
    %23 = arith.mulf %0, %22 : vector<2x64x300xf32>
    %c0_15 = arith.constant 0 : index
    %c0_16 = arith.constant 0 : index
    %c0_17 = arith.constant 0 : index
    %24 = vector.load %arg6[%c0_15, %c0_16, %c0_17] : memref<2x64x300xf32, #tpu.memory_space<vmem>>, vector<2x64x300xf32>
    tpu.vector_store %arg6[%c0_15, %c0_16, %c0_17], %23 {strides = array<i32>} : memref<2x64x300xf32, #tpu.memory_space<vmem>>, vector<2x64x300xf32>,
    return
  }
  func.func @transform_0(%arg0: i32) -> (i32, i32, i32) {
    %c0_i32 = arith.constant 0 : i32
    %c0_i32_0 = arith.constant 0 : i32
    %c0_i32_1 = arith.constant 0 : i32
    return %arg0, %c0_i32, %c0_i32_0 : i32, i32, i32
  }
  func.func @transform_1(%arg0: i32) -> (i32, i32) {
    %c0_i32 = arith.constant 0 : i32
    %c0_i32_0 = arith.constant 0 : i32
    %c0_i32_1 = arith.constant 0 : i32
    return %c0_i32, %c0_i32_0 : i32, i32
  }
  func.func @transform_2(%arg0: i32) -> (i32, i32) {
    %c0_i32 = arith.constant 0 : i32
    %c0_i32_0 = arith.constant 0 : i32
    %c0_i32_1 = arith.constant 0 : i32
    return %c0_i32, %c0_i32_0 : i32, i32
  }
  func.func @transform_3(%arg0: i32) -> (i32, i32) {
    %c0_i32 = arith.constant 0 : i32
    %c0_i32_0 = arith.constant 0 : i32
    %c0_i32_1 = arith.constant 0 : i32
    return %c0_i32, %c0_i32_0 : i32, i32
  }
  func.func @transform_4(%arg0: i32) -> (i32, i32) {
    %c0_i32 = arith.constant 0 : i32
    %c0_i32_0 = arith.constant 0 : i32
    %c0_i32_1 = arith.constant 0 : i32
    return %c0_i32, %c0_i32_0 : i32, i32
  }
  func.func @transform_5(%arg0: i32) -> (i32, i32, i32) {
    %c0_i32 = arith.constant 0 : i32
    %c0_i32_0 = arith.constant 0 : i32
    %c0_i32_1 = arith.constant 0 : i32
    return %arg0, %c0_i32, %c0_i32_0 : i32, i32, i32
  }
}

</mosaic_0001>

<bundles_post_ra>
// kernel: se_connect.1
= control target key start
LH: loop header
LB: loop body
LE: loop exit
PB: predicated region body
PF: predicated region fallthrough
CT: control target
= control target key end

     0   :  { %10 = vsyncpa [#allocation3], 0  ;;  %s950_s0 = inlined_call_operand.hbm [shape: f32[2,64,300], index: 0, kind: input, shape index: {}]   ;;  %s951_s1 = inlined_call_operand.vmem [shape: f32[64,32], index: 1, kind: input, shape index: {}]   ;;  %s952_s2 = inlined_call_operand.vmem [shape: f32[1,32], index: 2, kind: input, shape index: {}]   ;;  %s953_s3 = inlined_call_operand.vmem [shape: f32[32,64], index: 3, kind: input, shape index: {}]   ;;  %s954_s4 = inlined_call_operand.vmem [shape: f32[1,64], index: 4, kind: input, shape index: {}]   ;;  %s955_s5 = inlined_call_operand.hbm [shape: f32[2,64,300], index: 5, kind: output, shape index: {}]  }
   0x1   :  { %11 = vsyncpa [#allocation4], 0  ;;  %s16_s20 = sshll.u32 %s950_s0, 4  ;;  %s628_s21 = smov [#allocation2]   ;;  %s17_s20 = int_to_ptr.hbm [resolvable:$true] %s16_s20 }
   0x2   :  { %s18_s22 = sshll.u32 %s628_s21, 4  ;;  %s629_s23 = smov 384   ;;  %s19_s22 = int_to_ptr.vmem [resolvable:$true] %s18_s22 }
   0x3   :  { %s630_s24 = smov 24  }
   0x4   :  { %24 = dma.hbm_to_vmem [thread:$0]  %s17_s20, 6144, %s19_s22, [#allocation3], %s629_s23, %s629_s23, %s630_s24  }
   0x5   :  { %624 = dma.done.wait [#allocation3], 6144  }
   0x6   :  { %625 = vsyncadd [#allocation3], 4294961152  ;;  %vm86_vm0 = vcmask 359424   ;;  %v668_v0 = vld [vmem:[#allocation2 + $0xc0] sm:$0xff]  ;;  %v670_v1 = vld [vmem:[#allocation2 + $0xc8] sm:$0xff]  ;;  %vm215_vm1 = vcmask 130112  }
   0x7   :  { %975 = vst [vmem:[#allocation8_spill] sm:$0xff] %v668_v0  ;;  %v672_v2 = vld [vmem:[#allocation2 + $0xd0] sm:$0xff]  ;;  %v126_v3 = vadd.f32 %v670_v1, %v668_v0  ;;  %v678_v5 = vld [vmem:[#allocation2] sm:$0xff]  ;;  %v680_v6 = vld [vmem:[#allocation2 + $0x8] sm:$0xff]  ;;  %vm219_vm2 = vcmask 195712   ;;  %vm223_vm3 = vcmask 261312  }
   0x8   :  { %976 = vst [vmem:[#allocation9_spill] sm:$0xff] %v670_v1  ;;  %v127_v4 = vsel %vm86_vm0, %v672_v2, 0.0  ;;  %v682_v7 = vld [vmem:[#allocation2 + $0x10] sm:$0xff]  ;;  %v85_v8 = vadd.f32 %v680_v6, %v678_v5  ;;  %v690_v11 = vld [vmem:[#allocation2 + $0x38] sm:$0xff]  ;;  %v692_v12 = vld [vmem:[#allocation2 + $0x40] sm:$0xff]  ;;  %vm227_vm4 = vcmask 326912  }
   0x9   :  { %977 = vst [vmem:[#allocation10_spill] sm:$0xff] %v672_v2  ;;  %v87_v9 = vsel %vm86_vm0, %v682_v7, 0.0  ;;  %v688_v10 = vld [vmem:[#allocation2 + $0x30] sm:$0xff]  ;;  %v128_v13 = vadd.f32 %v127_v4, %v126_v3  ;;  %v97_v15 = vsel %vm86_vm0, %v692_v12, 0.0  ;;  %v698_v16 = vld [vmem:[#allocation2 + $0xd8] sm:$0xff]  ;;  %v700_v17 = vld [vmem:[#allocation2 + $0xe0] sm:$0xff] }
   0xa   :  { %v96_v14 = vadd.f32 %v690_v11, %v688_v10  ;;  %v702_v18 = vld [vmem:[#allocation2 + $0xe8] sm:$0xff]  ;;  %v88_v19 = vadd.f32 %v87_v9, %v85_v8  ;;  %v704_v20 = vld [vmem:[#allocation2 + $0x18] sm:$0xff]  ;;  %v706_v21 = vld [vmem:[#allocation2 + $0x20] sm:$0xff]  ;;  %v131_v24 = vadd.f32 %v700_v17, %v698_v16  ;;  %vm231_vm5 = vcmask 392512   ;;  %s533_s28 = sshll.u32 %s955_s5, 4  ;;  %s534_s28 = int_to_ptr.hbm [resolvable:$true] %s533_s28 }
   0xb   :  { %v708_v22 = vld [vmem:[#allocation2 + $0x28] sm:$0xff]  ;;  %129 = vadd.xlane.f32.xlu1 %v128_v13  ;;  %v712_v25 = vld [vmem:[#allocation2 + $0xf0] sm:$0xff]  ;;  %v714_v26 = vld [vmem:[#allocation2 + $0xf8] sm:$0xff]  ;;  %v132_v28 = vsel %vm86_vm0, %v702_v18, 0.0  ;;  %v91_v29 = vadd.f32 %v706_v21, %v704_v20  ;;  %vm235_vm6 = vcmask 458112   ;;  %vm239_vm7 = vcmask 523712  }
   0xc   :  { %v98_v23 = vadd.f32 %v97_v15, %v96_v14  ;;  %978 = vst [vmem:[#allocation11_spill] sm:$0xff] %v712_v25  ;;  %v716_v27 = vld [vmem:[#allocation2 + $0x100] sm:$0xff]  ;;  %89 = vadd.xlane.f32.xlu0 %v88_v19  ;;  %v92_v30 = vsel %vm86_vm0, %v708_v22, 0.0  ;;  %v136_v31 = vadd.f32 %v714_v26, %v712_v25  ;;  %v133_v33 = vadd.f32 %v132_v28, %v131_v24  ;;  %v728_v35 = vld [vmem:[#allocation2 + $0x108] sm:$0xff]  ;;  %v730_v36 = vld [vmem:[#allocation2 + $0x110] sm:$0xff] }
   0xd   :  { %979 = vst [vmem:[#allocation12_spill] sm:$0xff] %v714_v26  ;;  %v137_v32 = vsel %vm86_vm0, %v716_v27, 0.0  ;;  %v93_v34 = vadd.f32 %v92_v30, %v91_v29  ;;  %v732_v38 = vld [vmem:[#allocation2 + $0x118] sm:$0xff]  ;;  %v734_v39 = vld [vmem:[#allocation2 + $0x48] sm:$0xff]  ;;  %v736_v40 = vld [vmem:[#allocation2 + $0x50] sm:$0xff]  ;;  %v141_v44 = vadd.f32 %v730_v36, %v728_v35  ;;  %vm256_vm8 = vcmask 1041409  }
   0xe   :  { %980 = vst [vmem:[#allocation13_spill] sm:$0xff] %v716_v27  ;;  %99 = vadd.xlane.f32.xlu2 %v98_v23  ;;  %v138_v37 = vadd.f32 %v137_v32, %v136_v31  ;;  %v738_v41 = vld [vmem:[#allocation2 + $0x58] sm:$0xff]  ;;  %v740_v42 = vld [vmem:[#allocation2 + $0x60] sm:$0xff]  ;;  %v742_v43 = vld [vmem:[#allocation2 + $0x68] sm:$0xff]  ;;  %v142_v46 = vsel %vm86_vm0, %v732_v38, 0.0  ;;  %v101_v47 = vadd.f32 %v736_v40, %v734_v39  ;;  %vm258_vm9 = vcmask 523264  }
   0xf   :  { %981 = vst [vmem:[#allocation14_spill] sm:$0xff] %v728_v35  ;;  %v746_v45 = vld [vmem:[#allocation2 + $0x70] sm:$0xff]  ;;  %v102_v48 = vsel %vm86_vm0, %v738_v41, 0.0  ;;  %v106_v49 = vadd.f32 %v742_v43, %v740_v42  ;;  %v143_v51 = vadd.f32 %v142_v46, %v141_v44  ;;  %v758_v53 = vld [vmem:[#allocation2 + $0x78] sm:$0xff]  ;;  %v760_v54 = vld [vmem:[#allocation2 + $0x80] sm:$0xff]  ;;  %vm290_vm10 = vcmask 261120  }
  0x10   :  { %982 = vst [vmem:[#allocation15_spill] sm:$0xff] %v730_v36  ;;  %v107_v50 = vsel %vm86_vm0, %v746_v45, 0.0  ;;  %v103_v52 = vadd.f32 %v102_v48, %v101_v47  ;;  %v762_v56 = vld [vmem:[#allocation2 + $0x88] sm:$0xff]  ;;  %v764_v57 = vld [vmem:[#allocation2 + $0x120] sm:$0xff]  ;;  %v768_v59 = vld [vmem:[#allocation2 + $0x130] sm:$0xff]  ;;  %v111_v62 = vadd.f32 %v760_v54, %v758_v53 }
  0x11   :  { %983 = vst [vmem:[#allocation16_spill] sm:$0xff] %v732_v38  ;;  %v108_v55 = vadd.f32 %v107_v50, %v106_v49  ;;  %v766_v58 = vld [vmem:[#allocation2 + $0x128] sm:$0xff]  ;;  %v770_v60 = vld [vmem:[#allocation2 + $0x138] sm:$0xff]  ;;  %v772_v61 = vld [vmem:[#allocation2 + $0x140] sm:$0xff]  ;;  %v112_v3 = vsel %vm86_vm0, %v762_v56, 0.0  ;;  %v147_v8 = vsel %vm86_vm0, %v768_v59, 0.0 }
  0x12   :  { %984 = vst [vmem:[#allocation17_spill] sm:$0xff] %v764_v57  ;;  %v776_v63 = vld [vmem:[#allocation2 + $0x148] sm:$0xff]  ;;  %v146_v4 = vadd.f32 %v766_v58, %v764_v57  ;;  %v151_v9 = vadd.f32 %v772_v61, %v770_v60  ;;  %v113_v14 = vadd.f32 %v112_v3, %v111_v62  ;;  %v788_v19 = vld [vmem:[#allocation2 + $0x150] sm:$0xff]  ;;  %v790_v23 = vld [vmem:[#allocation2 + $0x158] sm:$0xff] }
  0x13   :  { %134 = vadd.xlane.f32.xlu1 %v133_v33  ;;  %985 = vst [vmem:[#allocation18_spill] sm:$0xff] %v766_v58  ;;  %v152_v13 = vsel %vm86_vm0, %v776_v63, 0.0  ;;  %v792_v28 = vld [vmem:[#allocation2 + $0x160] sm:$0xff]  ;;  %v794_v29 = vld [vmem:[#allocation2 + $0x90] sm:$0xff]  ;;  %v796_v30 = vld [vmem:[#allocation2 + $0x98] sm:$0xff] }
  0x14   :  { %94 = vadd.xlane.f32.xlu0 %v93_v34  ;;  %986 = vst [vmem:[#allocation19_spill] sm:$0xff] %v768_v59  ;;  %v148_v15 = vadd.f32 %v147_v8, %v146_v4  ;;  %v153_v24 = vadd.f32 %v152_v13, %v151_v9  ;;  %v798_v31 = vld [vmem:[#allocation2 + $0xa0] sm:$0xff]  ;;  %v800_v32 = vld [vmem:[#allocation2 + $0xa8] sm:$0xff]  ;;  %v802_v33 = vld [vmem:[#allocation2 + $0xb0] sm:$0xff]  ;;  %v156_v34 = vadd.f32 %v790_v23, %v788_v19  ;;  %v157_v44 = vsel %vm86_vm0, %v792_v28, 0.0 }
  0x15   :  { %987 = vst [vmem:[#allocation20_spill] sm:$0xff] %v770_v60  ;;  %v116_v46 = vadd.f32 %v796_v30, %v794_v29  ;;  %v117_v47 = vsel %vm86_vm0, %v798_v31, 0.0  ;;  %v121_v48 = vadd.f32 %v802_v33, %v800_v32  ;;  %v820_v62 = vld [vmem:[#allocation2 + $0x170] sm:$0xff]  ;;  %v822_v3 = vld [vmem:[#allocation2 + $0x178] sm:$0xff] }
  0x16   :  { %139 = vadd.xlane.f32.xlu2 %v138_v37  ;;  %988 = vst [vmem:[#allocation21_spill] sm:$0xff] %v772_v61  ;;  %v806_v37 = vld [vmem:[#allocation2 + $0xb8] sm:$0xff]  ;;  %v158_v50 = vadd.f32 %v157_v44, %v156_v34  ;;  %v162_v8 = vsel %vm86_vm0, %v822_v3, 0.0  ;;  %v188_v34 = vld [vmem:[%s951_s1 + $0x30] sm:$0xff]  ;;  %v187_v44 = vld [vmem:[%s951_s1 + $0x28] sm:$0xff] }
  0x17   :  { %989 = vst [vmem:[#allocation22_spill] sm:$0xff] %v776_v63  ;;  %v122_v49 = vsel %vm86_vm0, %v806_v37, 0.0  ;;  %v189_v13 = vld [vmem:[%s951_s1 + $0x38] sm:$0xff] }
  0x18   :  { %991 = vst [vmem:[#allocation24_spill] sm:$0xff] %v820_v62  ;;  %269 = vmatpush.msra.mxu0 %v189_v13 }
  0x19   :  { %992 = vst [vmem:[#allocation25_spill] sm:$0xff] %v822_v3 }
  0x1a   :  { %270 = vmatpush.msra.mxu0 %v188_v34 }
  0x1b   :  { %144 = vadd.xlane.f32.xlu1 %v143_v51  ;;  %v118_v51 = vadd.f32 %v117_v47, %v116_v46  ;;  %v186_v46 = vld [vmem:[%s951_s1 + $0x20] sm:$0xff]  ;;  %v185_v47 = vld [vmem:[%s951_s1 + $0x18] sm:$0xff] }
  0x1c   :  { %104 = vadd.xlane.f32.xlu0 %v103_v52  ;;  %v123_v52 = vadd.f32 %v122_v49, %v121_v48  ;;  %271 = vmatpush.msra.mxu0 %v187_v44  ;;  %v968_v44 = vlaneseq }
  0x1e   :  { %109 = vadd.xlane.f32.xlu2 %v108_v55  ;;  %v818_v55 = vld [vmem:[#allocation2 + $0x168] sm:$0xff]  ;;  %272 = vmatpush.msra.mxu0 %v186_v46  ;;  %v211_v46 = vand.u32 127, %v968_v44 }
  0x1f   :  { %990 = vst [vmem:[#allocation23_spill] sm:$0xff] %v818_v55  ;;  %v161_v4 = vadd.f32 %v820_v62, %v818_v55 }
  0x20   :  { %273 = vmatpush.msra.mxu0 %v185_v47  ;;  %v213_v63 = vadd.s32 4294967288, %v211_v46  ;;  %v221_v36 = vadd.s32 4294967272, %v211_v46  ;;  %v225_v1 = vadd.s32 4294967264, %v211_v46 }
  0x21   :  { %v163_v9 = vadd.f32 %v162_v8, %v161_v4  ;;  %v182_v4 = vld [vmem:[%s951_s1] sm:$0xff] }
  0x23   :  { %114 = vadd.xlane.f32.xlu1 %v113_v14 }
  0x24   :  { %149 = vadd.xlane.f32.xlu0 %v148_v15 }
  0x26   :  { %154 = vadd.xlane.f32.xlu2 %v153_v24 }
  0x2b   :  { %159 = vadd.xlane.f32.xlu1 %v158_v50 }
  0x2c   :  { %119 = vadd.xlane.f32.xlu0 %v118_v51  ;;  %v184_v51 = vld [vmem:[%s951_s1 + $0x10] sm:$0xff] }
  0x2d   :  { %274 = vmatpush.msra.mxu0 %v184_v51 }
  0x2e   :  { %124 = vadd.xlane.f32.xlu2 %v123_v52  ;;  %v183_v52 = vld [vmem:[%s951_s1 + $0x8] sm:$0xff] }
  0x2f   :  { %275 = vmatpush.msra.mxu0 %v183_v52 }
  0x31   :  { %276 = vmatpush.msra.mxu0 %v182_v4  ;;  %v217_v4 = vadd.s32 4294967280, %v211_v46 }
  0x34   :  { %164 = vadd.xlane.f32.xlu0 %v163_v9  ;;  %v285_v9 = vld [vmem:[%s953_s3 + $0x18] sm:$0xff] }
  0x35   :  { %306 = vmatpush.msra.mxu1 %v285_v9 }
  0x7e   :  { %v130_v14 = vpop.xlane.xlu1 %129 }
  0x7f   :  { %v90_v15 = vpop.xlane.xlu0 %89  ;;  %v174_v3 = vmul.f32 0.0033333334, %v130_v14 }
  0x80   :  { %v166_v62 = vmul.f32 0.0033333334, %v90_v15 }
  0x81   :  { %v100_v24 = vpop.xlane.xlu2 %99  ;;  %v241_v59 = vperm.slane %v174_v3, %v211_v46 }
  0x82   :  { %v168_v55 = vmul.f32 0.0033333334, %v100_v24  ;;  %v212_v58 = vperm.slane %v166_v62, %v211_v46 }
  0x84   :  { %v218_v2 = vperm.slane %v168_v55, %v217_v4 }
  0x86   :  { %v135_v48 = vpop.xlane.xlu1 %134 }
  0x87   :  { %v95_v49 = vpop.xlane.xlu0 %94  ;;  %v175_v52 = vmul.f32 0.0033333334, %v135_v48  ;;  %v229_v48 = vadd.s32 4294967256, %v211_v46 }
  0x88   :  { %v167_v61 = vmul.f32 0.0033333334, %v95_v49 }
  0x89   :  { %v140_v50 = vpop.xlane.xlu2 %139  ;;  %v242_v57 = vperm.slane %v175_v52, %v213_v63 }
  0x8a   :  { %v214_v38 = vperm.slane %v167_v61, %v213_v63  ;;  %v176_v9 = vmul.f32 0.0033333334, %v140_v50 }
  0x8b   :  { %v243_v62 = vsel %vm215_vm1, %v242_v57, %v241_v59 }
  0x8c   :  { %v216_v14 = vsel %vm215_vm1, %v214_v38, %v212_v58  ;;  %v244_v26 = vperm.slane %v176_v9, %v217_v4  ;;  %v237_v58 = vadd.s32 4294967240, %v211_v46 }
  0x8d   :  { %v220_v3 = vsel %vm219_vm2, %v218_v2, %v216_v14 }
  0x8e   :  { %v145_v8 = vpop.xlane.xlu1 %144  ;;  %v245_v52 = vsel %vm219_vm2, %v244_v26, %v243_v62 }
  0x8f   :  { %v105_v13 = vpop.xlane.xlu0 %104  ;;  %v177_v44 = vmul.f32 0.0033333334, %v145_v8 }
  0x90   :  { %v169_v35 = vmul.f32 0.0033333334, %v105_v13  ;;  %v233_v13 = vadd.s32 4294967248, %v211_v46 }
  0x91   :  { %v110_v34 = vpop.xlane.xlu2 %109  ;;  %v246_v63 = vperm.slane %v177_v44, %v221_v36 }
  0x92   :  { %v170_v0 = vmul.f32 0.0033333334, %v110_v34  ;;  %v222_v15 = vperm.slane %v169_v35, %v221_v36 }
  0x93   :  { %v247_v4 = vsel %vm223_vm3, %v246_v63, %v245_v52 }
  0x94   :  { %v226_v8 = vperm.slane %v170_v0, %v225_v1  ;;  %v224_v35 = vsel %vm223_vm3, %v222_v15, %v220_v3 }
  0x96   :  { %v115_v47 = vpop.xlane.xlu1 %114  ;;  %v228_v36 = vsel %vm227_vm4, %v226_v8, %v224_v35 }
  0x97   :  { %v150_v51 = vpop.xlane.xlu0 %149  ;;  %v171_v24 = vmul.f32 0.0033333334, %v115_v47 }
  0x98   :  { %v178_v49 = vmul.f32 0.0033333334, %v150_v51 }
  0x99   :  { %v155_v60 = vpop.xlane.xlu2 %154  ;;  %v230_v38 = vperm.slane %v171_v24, %v229_v48  ;;  %v283_v24 = vld [vmem:[%s953_s3 + $0x8] sm:$0xff] }
  0x9a   :  { %v179_v55 = vmul.f32 0.0033333334, %v155_v60  ;;  %v248_v34 = vperm.slane %v178_v49, %v225_v1 }
  0x9b   :  { %v232_v59 = vsel %vm231_vm5, %v230_v38, %v228_v36 }
  0x9c   :  { %v250_v57 = vperm.slane %v179_v55, %v229_v48  ;;  %v249_v2 = vsel %vm227_vm4, %v248_v34, %v247_v4  ;;  %v284_v48 = vld [vmem:[%s953_s3 + $0x10] sm:$0xff]  ;;  %v993_v55 = vlaneseq }
  0x9d   :  { %307 = vmatpush.msra.mxu1 %v284_v48 }
  0x9e   :  { %v160_v61 = vpop.xlane.xlu1 %159  ;;  %v251_v46 = vsel %vm231_vm5, %v250_v57, %v249_v2  ;;  %v335_v3 = vshrl.u32 %v993_v55, 7 }
  0x9f   :  { %v120_v27 = vpop.xlane.xlu0 %119  ;;  %v180_v51 = vmul.f32 0.0033333334, %v160_v61  ;;  %308 = vmatpush.msra.mxu1 %v283_v24  ;;  %v282_v61 = vld [vmem:[%s953_s3] sm:$0xff] }
  0xa0   :  { %v172_v25 = vmul.f32 0.0033333334, %v120_v27  ;;  %553 = vset.pattern.permute.xlu1 %v335_v3  ;;  %v348_v8 = vadd.s32 16, %v335_v3  ;;  %v342_v34 = vadd.s32 8, %v335_v3 }
  0xa1   :  { %v125_v50 = vpop.xlane.xlu2 %124  ;;  %v252_v0 = vperm.slane %v180_v51, %v233_v13  ;;  %309 = vmatpush.msra.mxu1 %v282_v61  ;;  %v571_v51 = vld [vmem:[%s954_s4] ss:$0 sm:$0xff] }
  0xa2   :  { %v173_v47 = vmul.f32 0.0033333334, %v125_v50  ;;  %v234_v27 = vperm.slane %v172_v25, %v233_v13  ;;  %v570_v13 = vld [vmem:[%s952_s2] ss:$0 sm:$0xff]  ;;  %555 = vset.pattern.permute.xlu0 %v348_v8  ;;  %554 = vset.pattern.permute.xlu2 %v342_v34  ;;  %s631_s2 = smov [#allocation5]  }
  0xa3   :  { %v253_v26 = vsel %vm235_vm6, %v252_v0, %v251_v46  ;;  %v354_v46 = vadd.s32 24, %v335_v3  ;;  %s531_s3 = sshll.u32 %s631_s2, 4  ;;  %s532_s3 = int_to_ptr.vmem [resolvable:$true] %s531_s3 }
  0xa4   :  { %v238_v60 = vperm.slane %v173_v47, %v237_v58  ;;  %v236_v9 = vsel %vm235_vm6, %v234_v27, %v232_v59 }
  0xa6   :  { %v240_v25 = vsel %vm239_vm7, %v238_v60, %v236_v9 }
  0xa7   :  { %v165_v1 = vpop.xlane.xlu0 %164 }
  0xa8   :  { %v181_v44 = vmul.f32 0.0033333334, %v165_v1 }
  0xaa   :  { %v254_v49 = vperm.slane %v181_v44, %v237_v58 }
  0xac   :  { %v255_v14 = vsel %vm239_vm7, %v254_v49, %v253_v26  ;;  %v360_v49 = vadd.s32 32, %v335_v3 }
  0xad   :  { %v257_v15 = vsel %vm256_vm8, %v255_v14, %v240_v25  ;;  %v372_v25 = vadd.s32 48, %v335_v3  ;;  %v366_v14 = vadd.s32 40, %v335_v3 }
  0xae   :  { %546 = vmatmul.msk.f32.vlgmr.msra.gmra.mxu0 %vm258_vm9, %v257_v15  ;;  %v378_v15 = vadd.s32 56, %v335_v3 }
 0x12b   :  { %v278_v50 = vpop.f32.mrf.mxu0 }
 0x12c   :  { %v279_v62 = vadd.f32 %v570_v13, %v278_v50 }
 0x12e   :  { %v281_v63 = vmax.f32 %v279_v62, 0.0 }
 0x130   :  { %547 = vmatmul.msk.f32.vlgmr.msra.gmra.mxu1 %vm290_vm10, %v281_v63 }
 0x1ad   :  { %v311_v35 = vpop.f32.mrf.mxu1 }
 0x1ae   :  { %v312_v38 = vadd.f32 %v571_v51, %v311_v35 }
 0x1b0   :  { %v548_v58 = vmul.f32 -1.442695, %v312_v38 }
 0x1b2   :  { %572 = vpow2.f32 %v548_v58 }
 0x1b8   :  { %v573_v47 = vpop.eup %572 }
 0x1b9   :  { %v317_v52 = vadd.f32 1.0, %v573_v47 }
 0x1bb   :  { %574 = vrcp.f32 %v317_v52  ;;  %v329_v36 = vand.u32 2147483648, %v317_v52  ;;  %v327_v0 = vand.u32 2147483647, %v317_v52  ;;  %vm323_vm12 = vweird.f32 %v317_v52 }
 0x1bd   :  { %v330_v59 = vor.u32 1.1754944e-38, %v329_v36  ;;  %vm328_vm14 = vcmp.eq.f32.partialorder %v327_v0, 8.507059e+37  ;;  %v998_v36 = vld [vmem:[#allocation9_spill] sm:$0xff]  ;;  %v999_v0 = vld [vmem:[#allocation10_spill] sm:$0xff] }
 0x1c1   :  { %v575_v27 = vpop.eup %574 }
 0x1c2   :  { %v319_v4 = vmul.f32 %v575_v27, %v317_v52  ;;  %vm324_vm11 = vweird.f32 %v575_v27 }
 0x1c3   :  { %vm325_vm13 = vmor %vm323_vm12, %vm324_vm11 }
 0x1c4   :  { %v320_v57 = vsub.f32 1.0, %v319_v4  ;;  %v996_v4 = vld [vmem:[#allocation13_spill] sm:$0xff] }
 0x1c6   :  { %v321_v2 = vmul.f32 %v575_v27, %v320_v57 }
 0x1c8   :  { %v322_v1 = vadd.f32 %v575_v27, %v321_v2 }
 0x1ca   :  { %v326_v60 = vsel %vm325_vm13, %v575_v27, %v322_v1  ;;  %v995_v27 = vld [vmem:[#allocation12_spill] sm:$0xff] }
 0x1cb   :  { %v331_v44 = vsel %vm328_vm14, %v330_v59, %v326_v60  ;;  %v1000_v60 = vld [vmem:[#allocation17_spill] sm:$0xff] }
 0x1cc   :  { %v333_v9 = vperm.slane %v331_v44, 0  ;;  %v382_v26 = vperm.slane %v331_v44, 1 }
 0x1ce   :  { %350 = vperm.xlu0 %555, %v333_v9   ;;  %344 = vperm.xlu2 %554, %v333_v9  }
 0x1cf   :  { %338 = vperm.xlu1 %553, %v333_v9  }
 0x1d6   :  { %562 = vset.pattern.permute.xlu0 %v342_v34  ;;  %556 = vset.pattern.permute.xlu2 %v354_v46 }
 0x1d7   :  { %557 = vset.pattern.permute.xlu1 %v360_v49 }
 0x1de   :  { %393 = vperm.xlu0 %562, %v382_v26   ;;  %356 = vperm.xlu2 %556, %v333_v9  }
 0x1df   :  { %362 = vperm.xlu1 %557, %v333_v9  }
 0x1e6   :  { %567 = vset.pattern.permute.xlu0 %v372_v25  ;;  %558 = vset.pattern.permute.xlu2 %v366_v14 }
 0x1e7   :  { %559 = vset.pattern.permute.xlu1 %v372_v25 }
 0x1ee   :  { %423 = vperm.xlu0 %567, %v382_v26   ;;  %368 = vperm.xlu2 %558, %v333_v9  }
 0x1ef   :  { %374 = vperm.xlu1 %559, %v333_v9  }
 0x1f6   :  { %560 = vset.pattern.permute.xlu2 %v378_v15  ;;  %569 = vset.pattern.permute.xlu0 %v378_v15 }
 0x1f7   :  { %561 = vset.pattern.permute.xlu1 %v335_v3 }
 0x1fe   :  { %380 = vperm.xlu2 %560, %v333_v9   ;;  %v1001_v9 = vld [vmem:[#allocation18_spill] sm:$0xff] }
 0x1ff   :  { %387 = vperm.xlu1 %561, %v382_v26  }
 0x206   :  { %563 = vset.pattern.permute.xlu2 %v348_v8 }
 0x207   :  { %564 = vset.pattern.permute.xlu1 %v354_v46 }
 0x20e   :  { %399 = vperm.xlu2 %563, %v382_v26  }
 0x20f   :  { %405 = vperm.xlu1 %564, %v382_v26  }
 0x216   :  { %565 = vset.pattern.permute.xlu2 %v360_v49  ;;  %v1002_v49 = vld [vmem:[#allocation19_spill] sm:$0xff] }
 0x217   :  { %566 = vset.pattern.permute.xlu1 %v366_v14  ;;  %v1003_v14 = vld [vmem:[#allocation14_spill] sm:$0xff] }
 0x21e   :  { %411 = vperm.xlu2 %565, %v382_v26  }
 0x21f   :  { %417 = vperm.xlu1 %566, %v382_v26  }
 0x226   :  { %568 = vset.pattern.permute.xlu2 %v378_v15 }
 0x228   :  { %v345_v48 = vpop.permute.xlu2 %344 }
 0x229   :  { %v434_v24 = vmul.f32 %v345_v48, %v704_v20  ;;  %v435_v61 = vmul.f32 %v345_v48, %v706_v21  ;;  %v436_v13 = vmul.f32 %v345_v48, %v708_v22  ;;  %v1004_v48 = vld [vmem:[#allocation15_spill] sm:$0xff] }
 0x22b   :  { %482 = vst [vmem:[#allocation5 + $0x18] sm:$0xff] %v434_v24 }
 0x22c   :  { %483 = vst [vmem:[#allocation5 + $0x20] sm:$0xff] %v435_v61  ;;  %v1005_v61 = vld [vmem:[#allocation16_spill] sm:$0xff] }
 0x22d   :  { %484 = vst.msk [vmem:[#allocation5 + $0x28] sm:$0xff] %vm86_vm0, %v436_v13 }
 0x22e   :  { %429 = vperm.xlu2 %568, %v382_v26  }
 0x238   :  { %v357_v50 = vpop.permute.xlu2 %356 }
 0x239   :  { %v440_v62 = vmul.f32 %v357_v50, %v734_v39  ;;  %v441_v63 = vmul.f32 %v357_v50, %v736_v40  ;;  %v442_v55 = vmul.f32 %v357_v50, %v738_v41 }
 0x23b   :  { %488 = vst [vmem:[#allocation5 + $0x48] sm:$0xff] %v440_v62  ;;  %v1006_v62 = vld [vmem:[#allocation23_spill] sm:$0xff] }
 0x23c   :  { %489 = vst [vmem:[#allocation5 + $0x50] sm:$0xff] %v441_v63 }
 0x23d   :  { %490 = vst.msk [vmem:[#allocation5 + $0x58] sm:$0xff] %vm86_vm0, %v442_v55  ;;  %v1007_v55 = vld [vmem:[#allocation24_spill] sm:$0xff] }
 0x240   :  { %v351_v20 = vpop.permute.xlu0 %350 }
 0x241   :  { %v437_v21 = vmul.f32 %v351_v20, %v688_v10  ;;  %v438_v22 = vmul.f32 %v351_v20, %v690_v11  ;;  %v439_v3 = vmul.f32 %v351_v20, %v692_v12  ;;  %v339_v8 = vpop.permute.xlu1 %338 }
 0x242   :  { %v431_v34 = vmul.f32 %v339_v8, %v678_v5  ;;  %v432_v39 = vmul.f32 %v339_v8, %v680_v6  ;;  %v433_v40 = vmul.f32 %v339_v8, %v682_v7  ;;  %v1009_v8 = vld [vmem:[#allocation20_spill] sm:$0xff] }
 0x243   :  { %485 = vst [vmem:[#allocation5 + $0x30] sm:$0xff] %v437_v21  ;;  %v1008_v21 = vld [vmem:[#allocation25_spill] sm:$0xff] }
 0x244   :  { %486 = vst [vmem:[#allocation5 + $0x38] sm:$0xff] %v438_v22 }
 0x245   :  { %487 = vst.msk [vmem:[#allocation5 + $0x40] sm:$0xff] %vm86_vm0, %v439_v3 }
 0x246   :  { %479 = vst [vmem:[#allocation5] sm:$0xff] %v431_v34 }
 0x247   :  { %480 = vst [vmem:[#allocation5 + $0x8] sm:$0xff] %v432_v39  ;;  %v1010_v39 = vld [vmem:[#allocation21_spill] sm:$0xff] }
 0x248   :  { %481 = vst.msk [vmem:[#allocation5 + $0x10] sm:$0xff] %vm86_vm0, %v433_v40  ;;  %v369_v10 = vpop.permute.xlu2 %368 }
 0x249   :  { %v446_v11 = vmul.f32 %v369_v10, %v758_v53  ;;  %v447_v12 = vmul.f32 %v369_v10, %v760_v54  ;;  %v448_v41 = vmul.f32 %v369_v10, %v762_v56  ;;  %v1011_v10 = vld [vmem:[#allocation22_spill] sm:$0xff] }
 0x24b   :  { %494 = vst [vmem:[#allocation5 + $0x78] sm:$0xff] %v446_v11 }
 0x24c   :  { %495 = vst [vmem:[#allocation5 + $0x80] sm:$0xff] %v447_v12 }
 0x24d   :  { %496 = vst.msk [vmem:[#allocation5 + $0x88] sm:$0xff] %vm86_vm0, %v448_v41 }
 0x250   :  { %v394_v5 = vpop.permute.xlu0 %393 }
 0x251   :  { %v458_v6 = vmul.f32 %v394_v5, %v698_v16  ;;  %v459_v7 = vmul.f32 %v394_v5, %v700_v17  ;;  %v460_v51 = vmul.f32 %v394_v5, %v702_v18  ;;  %v363_v35 = vpop.permute.xlu1 %362 }
 0x252   :  { %v443_v38 = vmul.f32 %v363_v35, %v740_v42  ;;  %v444_v53 = vmul.f32 %v363_v35, %v742_v43  ;;  %v445_v54 = vmul.f32 %v363_v35, %v746_v45 }
 0x253   :  { %506 = vst [vmem:[#allocation5 + $0xd8] sm:$0xff] %v458_v6 }
 0x254   :  { %507 = vst [vmem:[#allocation5 + $0xe0] sm:$0xff] %v459_v7 }
 0x255   :  { %508 = vst.msk [vmem:[#allocation5 + $0xe8] sm:$0xff] %vm86_vm0, %v460_v51 }
 0x256   :  { %491 = vst [vmem:[#allocation5 + $0x60] sm:$0xff] %v443_v38 }
 0x257   :  { %492 = vst [vmem:[#allocation5 + $0x68] sm:$0xff] %v444_v53 }
 0x258   :  { %493 = vst.msk [vmem:[#allocation5 + $0x70] sm:$0xff] %vm86_vm0, %v445_v54  ;;  %v381_v16 = vpop.permute.xlu2 %380 }
 0x259   :  { %v452_v17 = vmul.f32 %v381_v16, %v800_v32  ;;  %v453_v18 = vmul.f32 %v381_v16, %v802_v33  ;;  %v454_v56 = vmul.f32 %v381_v16, %v806_v37  ;;  %v994_v37 = vld [vmem:[#allocation11_spill] sm:$0xff] }
 0x25b   :  { %500 = vst [vmem:[#allocation5 + $0xa8] sm:$0xff] %v452_v17 }
 0x25c   :  { %501 = vst [vmem:[#allocation5 + $0xb0] sm:$0xff] %v453_v18 }
 0x25d   :  { %502 = vst.msk [vmem:[#allocation5 + $0xb8] sm:$0xff] %vm86_vm0, %v454_v56 }
 0x260   :  { %v424_v42 = vpop.permute.xlu0 %423 }
 0x261   :  { %v473_v43 = vmul.f32 %v424_v42, %v788_v19  ;;  %v474_v45 = vmul.f32 %v424_v42, %v790_v23  ;;  %v475_v58 = vmul.f32 %v424_v42, %v792_v28  ;;  %v375_v47 = vpop.permute.xlu1 %374 }
 0x262   :  { %v449_v52 = vmul.f32 %v375_v47, %v794_v29  ;;  %v450_v32 = vmul.f32 %v375_v47, %v796_v30  ;;  %v451_v33 = vmul.f32 %v375_v47, %v798_v31  ;;  %v997_v30 = vld [vmem:[#allocation8_spill] sm:$0xff] }
 0x263   :  { %521 = vst [vmem:[#allocation5 + $0x150] sm:$0xff] %v473_v43 }
 0x264   :  { %522 = vst [vmem:[#allocation5 + $0x158] sm:$0xff] %v474_v45 }
 0x265   :  { %523 = vst.msk [vmem:[#allocation5 + $0x160] sm:$0xff] %vm86_vm0, %v475_v58 }
 0x266   :  { %497 = vst [vmem:[#allocation5 + $0x90] sm:$0xff] %v449_v52 }
 0x267   :  { %498 = vst [vmem:[#allocation5 + $0x98] sm:$0xff] %v450_v32 }
 0x268   :  { %499 = vst.msk [vmem:[#allocation5 + $0xa0] sm:$0xff] %vm86_vm0, %v451_v33  ;;  %v400_v19 = vpop.permute.xlu2 %399 }
 0x269   :  { %v461_v23 = vmul.f32 %v400_v19, %v994_v37  ;;  %v462_v28 = vmul.f32 %v400_v19, %v995_v27  ;;  %v463_v57 = vmul.f32 %v400_v19, %v996_v4 }
 0x26b   :  { %509 = vst [vmem:[#allocation5 + $0xf0] sm:$0xff] %v461_v23 }
 0x26c   :  { %510 = vst [vmem:[#allocation5 + $0xf8] sm:$0xff] %v462_v28 }
 0x26d   :  { %511 = vst.msk [vmem:[#allocation5 + $0x100] sm:$0xff] %vm86_vm0, %v463_v57 }
 0x271   :  { %v388_v29 = vpop.permute.xlu1 %387 }
 0x272   :  { %v455_v31 = vmul.f32 %v388_v29, %v997_v30  ;;  %v456_v2 = vmul.f32 %v388_v29, %v998_v36  ;;  %v457_v1 = vmul.f32 %v388_v29, %v999_v0 }
 0x274   :  { %503 = vst [vmem:[#allocation5 + $0xc0] sm:$0xff] %v455_v31 }
 0x275   :  { %504 = vst [vmem:[#allocation5 + $0xc8] sm:$0xff] %v456_v2 }
 0x276   :  { %505 = vst.msk [vmem:[#allocation5 + $0xd0] sm:$0xff] %vm86_vm0, %v457_v1 }
 0x278   :  { %v412_v59 = vpop.permute.xlu2 %411 }
 0x279   :  { %v467_v44 = vmul.f32 %v412_v59, %v1000_v60  ;;  %v468_v46 = vmul.f32 %v412_v59, %v1001_v9  ;;  %v469_v26 = vmul.f32 %v412_v59, %v1002_v49 }
 0x27b   :  { %515 = vst [vmem:[#allocation5 + $0x120] sm:$0xff] %v467_v44 }
 0x27c   :  { %516 = vst [vmem:[#allocation5 + $0x128] sm:$0xff] %v468_v46 }
 0x27d   :  { %517 = vst.msk [vmem:[#allocation5 + $0x130] sm:$0xff] %vm86_vm0, %v469_v26 }
 0x281   :  { %v406_v25 = vpop.permute.xlu1 %405 }
 0x282   :  { %v464_v15 = vmul.f32 %v406_v25, %v1003_v14  ;;  %v465_v24 = vmul.f32 %v406_v25, %v1004_v48  ;;  %v466_v13 = vmul.f32 %v406_v25, %v1005_v61 }
 0x284   :  { %512 = vst [vmem:[#allocation5 + $0x108] sm:$0xff] %v464_v15 }
 0x285   :  { %513 = vst [vmem:[#allocation5 + $0x110] sm:$0xff] %v465_v24 }
 0x286   :  { %514 = vst.msk [vmem:[#allocation5 + $0x118] sm:$0xff] %vm86_vm0, %v466_v13 }
 0x288   :  { %v430_v50 = vpop.permute.xlu2 %429 }
 0x289   :  { %v476_v63 = vmul.f32 %v430_v50, %v1006_v62  ;;  %v477_v20 = vmul.f32 %v430_v50, %v1007_v55  ;;  %v478_v22 = vmul.f32 %v430_v50, %v1008_v21 }
 0x28b   :  { %524 = vst [vmem:[#allocation5 + $0x168] sm:$0xff] %v476_v63 }
 0x28c   :  { %525 = vst [vmem:[#allocation5 + $0x170] sm:$0xff] %v477_v20 }
 0x28d   :  { %526 = vst.msk [vmem:[#allocation5 + $0x178] sm:$0xff] %vm86_vm0, %v478_v22 }
 0x291   :  { %v418_v3 = vpop.permute.xlu1 %417 }
 0x292   :  { %v470_v34 = vmul.f32 %v418_v3, %v1009_v8  ;;  %v471_v40 = vmul.f32 %v418_v3, %v1010_v39  ;;  %v472_v11 = vmul.f32 %v418_v3, %v1011_v10 }
 0x294   :  { %518 = vst [vmem:[#allocation5 + $0x138] sm:$0xff] %v470_v34 }
 0x295   :  { %519 = vst [vmem:[#allocation5 + $0x140] sm:$0xff] %v471_v40 }
 0x296   :  { %520 = vst.msk [vmem:[#allocation5 + $0x148] sm:$0xff] %vm86_vm0, %v472_v11 }
 0x297   :  { %539 = dma.vmem_to_hbm [thread:$0]  %s532_s3, 6144, %s534_s28, [#allocation4], %s629_s23, %s629_s23, %s630_s24  }
 0x298   :  { %626 = dma.done.wait [#allocation4], 6144  }
 0x299   :  { %627 = vsyncadd [#allocation4], 4294961152 }
 0x29a   :  { %544 = vsyncpa [#allocation3], 1 }
 0x29b   :  { %545 = vsyncpa [#allocation4], 1 }

</bundles_post_ra>
